<compile_context>
chip_gen: v6e
topology: v6e:2x2x1
jax: 0.10.0
libtpu: 0.0.40
codegen_flags: <defaults>
</compile_context>

<pallas_src>
import math

import jax
import jax.numpy as jnp
from jax.experimental import pallas as pl
from jax.experimental.pallas import tpu as pltpu


# --------------------------------------------------------------------------
# Kernels
# --------------------------------------------------------------------------

def _flat_kernel_bias(x_ref, e_ref, w_ref, b_ref, o_ref):
    """Lane-dense path (F*D % 128 == 0, D % 128 != 0).

    x_ref: (TB, F)     f32   batch tile
    e_ref: (F, F*D)    f32   0/1 one-hot scatter matrix (VMEM-resident)
    w_ref: (1, F*D)    f32   flattened weight (VMEM-resident)
    b_ref: (1, F*D)    f32   flattened bias   (VMEM-resident)
    o_ref: (TB, F*D)   f32   lane-dense output tile
    """
    # x_exp[b, f*D + d] = x[b, f] — built on the MXU (different VLIW slot from
    # the VPU FMA / vector stores, so it is essentially free filler).
    # precision=HIGHEST keeps the one-hot matmul exact in f32.
    x_exp = jnp.dot(x_ref[...], e_ref[...],
                    preferred_element_type=jnp.float32,
                    precision=jax.lax.Precision.HIGHEST)
    o_ref[...] = w_ref[...] * x_exp + b_ref[...]


def _flat_kernel_nobias(x_ref, e_ref, w_ref, o_ref):
    x_exp = jnp.dot(x_ref[...], e_ref[...],
                    preferred_element_type=jnp.float32,
                    precision=jax.lax.Precision.HIGHEST)
    o_ref[...] = w_ref[...] * x_exp


def _kernel_3d_bias(x_ref, w_ref, b_ref, o_ref):
    """3-D path.  Lane-dense when D % 128 == 0, masked-store fallback otherwise.

    x_ref: (TB, F, 1) f32 — F on sublanes, so broadcasting to (TB, F, D) is a
                            cheap lane splat (no relayout).
    w_ref, b_ref: (F, D) f32 (VMEM-resident).   o_ref: (TB, F, D) f32.
    """
    o_ref[...] = w_ref[...][None] * x_ref[...] + b_ref[...][None]


def _kernel_3d_nobias(x_ref, w_ref, o_ref):
    o_ref[...] = w_ref[...][None] * x_ref[...]


# --------------------------------------------------------------------------
# Wrapper
# --------------------------------------------------------------------------

_MAX_EXPAND_BYTES = 8 * 1024 * 1024   # cap on the resident one-hot matrix


def _vmem_capacity_bytes():
    try:
        return int(pltpu.get_tpu_info().vmem_capacity_bytes)
    except Exception:
        return 128 * 1024 * 1024       # v5e/v6e default


def _pick_batch_tile(batch, row_bytes, target_block_bytes, min_grid_steps):
    """Rows per grid step: large enough to amortize ~0.35us/step overhead,
    small enough that double-buffered blocks (+ temporaries) fit VMEM, and —
    on v7x — long enough a grid that both TensorCores get work."""
    if batch <= 8:
        return batch                   # full-extent block (always legal)
    tb = target_block_bytes // max(row_bytes, 1)
    tb = max(8, min(batch, (tb // 8) * 8))
    if min_grid_steps > 1 and batch // min_grid_steps >= 8:
        cap = ((batch // min_grid_steps) // 8) * 8
        tb = min(tb, max(8, cap))
    return int(tb)


def numerical_feature_tokenizer(x, weight, bias=None):
    """out[b, f, d] = weight[f, d] * x[b, f] (+ bias[f, d])."""
    x = jnp.asarray(x, jnp.float32)
    weight = jnp.asarray(weight, jnp.float32)
    B, F = x.shape
    F2, D = weight.shape
    assert F == F2, "weight first dim must match n_features"
    has_bias = bias is not None
    if has_bias:
        bias = jnp.asarray(bias, jnp.float32)

    fd = F * D
    row_bytes = fd * 4

    # Per-generation tiling / VMEM budget.
    vmem_cap = _vmem_capacity_bytes()
    if vmem_cap >= 96 * 1024 * 1024:        # v5e / v6e: 128 MiB VMEM, 1 TC
        target_block, min_steps = 16 * 1024 * 1024, 1
    else:                                    # v7x: 64 MiB VMEM, 2 TCs
        target_block, min_steps = 6 * 1024 * 1024, 4

    tb = _pick_batch_tile(B, row_bytes, target_block, min_steps)
    grid = (pl.cdiv(B, tb),)

    cost = pl.CostEstimate(
        flops=(3 if has_bias else 2) * B * fd,
        transcendentals=0,
        bytes_accessed=4 * (B * fd + (2 if has_bias else 1) * fd + B * F),
    )

    e_bytes = F * fd * 4
    # Dispatch:
    #   D % 128 == 0            -> 3-D kernel (already lane-dense, cheapest)
    #   F*D % 128 == 0, E fits  -> flat kernel with MXU one-hot expansion
    #   otherwise               -> 3-D fallback (masked vst on the last dim)
    use_flat = (D % 128 != 0) and (fd % 128 == 0) and (e_bytes <= _MAX_EXPAND_BYTES)

    if use_flat:
        # Working set: double-buffered out + x, resident E/w/b, plus Mosaic's
        # in-kernel full-tile temporaries (x_exp and the w*x_exp product).
        working = (2 * tb * fd * 4 + 2 * tb * F * 4
                   + e_bytes + (2 if has_bias else 1) * fd * 4
                   + 2 * tb * fd * 4)
    else:
        working = (2 * tb * fd * 4 + 2 * tb * F * 4
                   + (2 if has_bias else 1) * fd * 4
                   + tb * fd * 4)
    vmem_limit = int(min(max(32 * 1024 * 1024, working + (4 << 20)),
                         int(0.9 * vmem_cap)))

    cparams = pltpu.CompilerParams(
        dimension_semantics=("parallel",),    # batch tiles are independent
        vmem_limit_bytes=vmem_limit,
    )

    if use_flat:
        # 0/1 one-hot scatter matrix: E[f, f*D + d] = 1.
        expand = (jnp.arange(fd, dtype=jnp.int32) // D
                  == jnp.arange(F, dtype=jnp.int32)[:, None]).astype(jnp.float32)
        w_flat = weight.reshape(1, fd)        # layout plumbing, done once

        in_specs = [
            pl.BlockSpec((tb, F), lambda i: (i, 0)),      # x: batch-tiled
            pl.BlockSpec((F, fd), lambda i: (0, 0)),      # E: resident
            pl.BlockSpec((1, fd), lambda i: (0, 0)),      # weight: resident
        ]
        args = [x, expand, w_flat]
        kernel = _flat_kernel_nobias
        if has_bias:
            in_specs.append(pl.BlockSpec((1, fd), lambda i: (0, 0)))
            args.append(bias.reshape(1, fd))
            kernel = _flat_kernel_bias

        out_flat = pl.pallas_call(
            kernel,
            out_shape=jax.ShapeDtypeStruct((B, fd), jnp.float32),
            grid_spec=pltpu.PrefetchScalarGridSpec(
                num_scalar_prefetch=0,
                grid=grid,
                in_specs=in_specs,
                out_specs=pl.BlockSpec((tb, fd), lambda i: (i, 0)),
            ),
            compiler_params=cparams,
            cost_estimate=cost,
        )(*args)
        return out_flat.reshape(B, F, D)      # free row-major metadata reshape

    # 3-D path: native (TB, F, D) blocks; x shipped as (B, F, 1) so the
    # in-kernel broadcast is a lane splat rather than a lane->sublane relayout.
    x3 = x.reshape(B, F, 1)
    in_specs = [
        pl.BlockSpec((tb, F, 1), lambda i: (i, 0, 0)),    # x: batch-tiled
        pl.BlockSpec((F, D), lambda i: (0, 0)),           # weight: resident
    ]
    args = [x3, weight]
    kernel = _kernel_3d_nobias
    if has_bias:
        in_specs.append(pl.BlockSpec((F, D), lambda i: (0, 0)))
        args.append(bias)
        kernel = _kernel_3d_bias

    out = pl.pallas_call(
        kernel,
        out_shape=jax.ShapeDtypeStruct((B, F, D), jnp.float32),
        grid_spec=pltpu.PrefetchScalarGridSpec(
            num_scalar_prefetch=0,
            grid=grid,
            in_specs=in_specs,
            out_specs=pl.BlockSpec((tb, F, D), lambda i: (i, 0, 0)),
        ),
        compiler_params=cparams,
        cost_estimate=cost,
    )(*args)
    return out


# --------------------------------------------------------------------------
# Parameter init mirroring _TokenInitialization
# --------------------------------------------------------------------------

def init_params(key, n_features, d_token, bias=True, initialization="uniform"):
    d_sqrt_inv = 1.0 / math.sqrt(d_token)
    kw, kb = jax.random.split(key)
    if initialization == "uniform":
        weight = jax.random.uniform(
            kw, (n_features, d_token), jnp.float32, -d_sqrt_inv, d_sqrt_inv)
        b = (jax.random.uniform(
            kb, (n_features, d_token), jnp.float32, -d_sqrt_inv, d_sqrt_inv)
             if bias else None)
    else:  # normal
        weight = jax.random.normal(kw, (n_features, d_token), jnp.float32) * d_sqrt_inv
        b = (jax.random.normal(kb, (n_features, d_token), jnp.float32) * d_sqrt_inv
             if bias else None)
    return weight, b


if __name__ == "__main__":
    key = jax.random.PRNGKey(0)
    k_x, k_p = jax.random.split(key)

    batch, n_features, d_token = 2, 4, 32
    x = jax.random.normal(k_x, (batch, n_features), dtype=jnp.float32)

    # 1) Flat lane-dense path with MXU one-hot expansion (F*D = 128, D < 128).
    weight, bias = init_params(k_p, n_features, d_token, bias=True,
                               initialization="uniform")
    out = jax.block_until_ready(numerical_feature_tokenizer(x, weight, bias))
    ref = weight[None] * x[..., None] + bias[None]
    assert out.shape == (batch, n_features, d_token)
    assert jnp.allclose(out, ref, atol=1e-5), "mismatch vs reference (flat MXU path)"

    # 2) 3-D masked-store fallback (F*D = 96, not a multiple of 128) + no bias.
    d_token2 = 24
    weight2, _ = init_params(k_p, n_features, d_token2, bias=False,
                             initialization="normal")
    out2 = jax.block_until_ready(numerical_feature_tokenizer(x, weight2, None))
    ref2 = weight2[None] * x[..., None]
    assert out2.shape == (batch, n_features, d_token2)
    assert jnp.allclose(out2, ref2, atol=1e-6), "mismatch vs reference (3-D fallback)"

    # 3) D % 128 == 0 fast path: 3-D kernel is already lane-dense.
    d_token3 = 128
    weight3, bias3 = init_params(k_p, n_features, d_token3, bias=True,
                                 initialization="uniform")
    out3 = jax.block_until_ready(numerical_feature_tokenizer(x, weight3, bias3))
    ref3 = weight3[None] * x[..., None] + bias3[None]
    assert out3.shape == (batch, n_features, d_token3)
    assert jnp.allclose(out3, ref3, atol=1e-6), "mismatch vs reference (D%128==0 path)"

    print("KERNEL_OK")
</pallas_src>

<mosaic_0001>
module attributes {stable_mosaic.version = 11 : i64} {
  func.func @_flat_kernel_bias(%arg0: i32, %arg1: memref<2x4xf32, #tpu.memory_space<vmem>>, %arg2: memref<4x128xf32, #tpu.memory_space<vmem>>, %arg3: memref<1x128xf32, #tpu.memory_space<vmem>>, %arg4: memref<1x128xf32, #tpu.memory_space<vmem>>, %arg5: memref<2x128xf32, #tpu.memory_space<vmem>>) attributes {dimension_semantics = [#tpu.dimension_semantics<parallel>], iteration_bounds = array<i64: 1>, scalar_prefetch = 0 : i64, scratch_operands = 0 : i64, tpu.core_type = #tpu.core_type<tc>, window_params = [{transform_indices = @transform_0, window_bounds = array<i64: 2, 4>}, {pipeline_mode = #tpu.pipeline_mode<synchronous>, transform_indices = @transform_1, window_bounds = array<i64: 4, 128>}, {pipeline_mode = #tpu.pipeline_mode<synchronous>, transform_indices = @transform_2, window_bounds = array<i64: 1, 128>}, {pipeline_mode = #tpu.pipeline_mode<synchronous>, transform_indices = @transform_3, window_bounds = array<i64: 1, 128>}, {transform_indices = @transform_4, window_bounds = array<i64: 2, 128>}]} {
    %c0 = arith.constant 0 : index
    %c0_0 = arith.constant 0 : index
    %0 = vector.load %arg1[%c0, %c0_0] : memref<2x4xf32, #tpu.memory_space<vmem>>, vector<2x4xf32>
    %c0_1 = arith.constant 0 : index
    %c0_2 = arith.constant 0 : index
    %1 = vector.load %arg2[%c0_1, %c0_2] : memref<4x128xf32, #tpu.memory_space<vmem>>, vector<4x128xf32>
    %cst = arith.constant dense<0.000000e+00> : vector<2x128xf32>
    %2 = tpu.matmul %0, %1, %cst {dimension_numbers = #tpu.dot_dimension_numbers<[1], [0], [0], [1], [0, 0, 1, 1], [], []>, precision = #tpu.contract_precision<fp32>} : vector<2x4xf32>, vector<4x128xf32>, vector<2x128xf32> -> vector<2x128xf32>
    %c0_3 = arith.constant 0 : index
    %c0_4 = arith.constant 0 : index
    %3 = vector.load %arg3[%c0_3, %c0_4] : memref<1x128xf32, #tpu.memory_space<vmem>>, vector<1x128xf32>
    %4 = vector.broadcast %3 : vector<1x128xf32> to vector<2x128xf32>
    %5 = arith.mulf %4, %2 : vector<2x128xf32>
    %c0_5 = arith.constant 0 : index
    %c0_6 = arith.constant 0 : index
    %6 = vector.load %arg4[%c0_5, %c0_6] : memref<1x128xf32, #tpu.memory_space<vmem>>, vector<1x128xf32>
    %7 = vector.broadcast %6 : vector<1x128xf32> to vector<2x128xf32>
    %8 = arith.addf %5, %7 : vector<2x128xf32>
    %c0_7 = arith.constant 0 : index
    %c0_8 = arith.constant 0 : index
    %9 = vector.load %arg5[%c0_7, %c0_8] : memref<2x128xf32, #tpu.memory_space<vmem>>, vector<2x128xf32>
    tpu.vector_store %arg5[%c0_7, %c0_8], %8 {strides = array<i32>} : memref<2x128xf32, #tpu.memory_space<vmem>>, vector<2x128xf32>,
    return
  }
  func.func @transform_0(%arg0: i32) -> (i32, i32) {
    %c0_i32 = arith.constant 0 : i32
    %c0_i32_0 = arith.constant 0 : i32
    return %arg0, %c0_i32 : i32, i32
  }
  func.func @transform_1(%arg0: i32) -> (i32, i32) {
    %c0_i32 = arith.constant 0 : i32
    %c0_i32_0 = arith.constant 0 : i32
    %c0_i32_1 = arith.constant 0 : i32
    return %c0_i32, %c0_i32_0 : i32, i32
  }
  func.func @transform_2(%arg0: i32) -> (i32, i32) {
    %c0_i32 = arith.constant 0 : i32
    %c0_i32_0 = arith.constant 0 : i32
    %c0_i32_1 = arith.constant 0 : i32
    return %c0_i32, %c0_i32_0 : i32, i32
  }
  func.func @transform_3(%arg0: i32) -> (i32, i32) {
    %c0_i32 = arith.constant 0 : i32
    %c0_i32_0 = arith.constant 0 : i32
    %c0_i32_1 = arith.constant 0 : i32
    return %c0_i32, %c0_i32_0 : i32, i32
  }
  func.func @transform_4(%arg0: i32) -> (i32, i32) {
    %c0_i32 = arith.constant 0 : i32
    %c0_i32_0 = arith.constant 0 : i32
    return %arg0, %c0_i32 : i32, i32
  }
}

</mosaic_0001>

<bundles_post_ra>
// kernel: tpu_custom_call.1
= control target key start
LH: loop header
LB: loop body
LE: loop exit
PB: predicated region body
PF: predicated region fallthrough
CT: control target
= control target key end

     0   :  { %9 = vsyncpa [#allocation3], 0  ;;  %s697_s0 = inlined_call_operand.hbm [shape: f32[2,4], index: 0, kind: input, shape index: {}]   ;;  %s698_s1 = inlined_call_operand.hbm [shape: f32[4,128], index: 1, kind: input, shape index: {}]   ;;  %s699_s2 = inlined_call_operand.vmem [shape: f32[1,128], index: 2, kind: input, shape index: {}]   ;;  %s700_s3 = inlined_call_operand.vmem [shape: f32[1,128], index: 3, kind: input, shape index: {}]   ;;  %s701_s4 = inlined_call_operand.hbm [shape: f32[2,128], index: 4, kind: output, shape index: {}]  }
   0x1   :  { %10 = vsyncpa [#allocation6], 0 }
   0x2   :  { %11 = vsyncpa [#allocation4], 0  ;;  %s646_s15 = smov [#allocation2]   ;;  %s647_s17 = smov [#allocation5]  }
   0x3   :  { %s18_s16 = sshll.u32 %s646_s15, 4  ;;  %s28_s18 = sshll.u32 %s647_s17, 4  ;;  %s19_s16 = int_to_ptr.vmem [resolvable:$true] %s18_s16  ;;  %s29_s18 = int_to_ptr.vmem [resolvable:$true] %s28_s18 }
   0x4   :  { %s588_s19 = scalar_lea.vmem %s19_s16, 32  ;;  %p593_p1 = scmp.lt.s32.totalorder %s19_s16, %s19_s16 }
   0x5   :  { %p589_p0 = scmp.ne.s32.totalorder %s19_s16, %s588_s19  ;;  %p594_p2 = scmp.lt.s32.totalorder %s588_s19, %s588_s19 }
   0x7   :  { %p595_p3 = por %p594_p2, %p593_p1 }
   0x9   :  { %p596_p4 = pnand %p595_p3, %p589_p0 }
   0xb   :  { %599 = shalt.err (!%p596_p4)
}
   0xc   :  { %21 = dma.hbm_to_vmem [thread:$0]  %s697_s0, 32, %s19_s16, [#allocation3]  }
   0xd   :  { %s608_s22 = scalar_lea.vmem %s29_s18, 64  ;;  %p613_p6 = scmp.lt.s32.totalorder %s29_s18, %s29_s18 }
   0xe   :  { %p609_p5 = scmp.ne.s32.totalorder %s29_s18, %s608_s22  ;;  %p614_p7 = scmp.lt.s32.totalorder %s608_s22, %s608_s22 }
  0x10   :  { %p615_p8 = por %p614_p7, %p613_p6 }
  0x12   :  { %p616_p9 = pnand %p615_p8, %p609_p5 }
  0x14   :  { %619 = shalt.err (!%p616_p9)
}
  0x15   :  { %31 = dma.hbm_to_vmem [thread:$0]  %s698_s1, 64, %s29_s18, [#allocation6]  }
  0x16   :  { %640 = dma.done.wait [#allocation3], 32  }
  0x17   :  { %641 = vsyncadd [#allocation3], 4294967264 }
  0x18   :  { %642 = dma.done.wait [#allocation6], 64  }
  0x19   :  { %643 = vsyncadd [#allocation6], 4294967232  ;;  %v648_v0 = vmov 0.0   ;;  %vm649_vm0 = vmmov 0   ;;  %vm48_vm1 = vcmask 1043456   ;;  %vm44_vm2 = vcmask 31744  }
  0x1a   :  { %545 = vmatprep.subr.mxu0 %v648_v0  ;;  %547 = vmatprep.mubr.msk.f32.mxu0 %vm649_vm0, %v648_v0  ;;  %v43_v1 = vld [vmem:[#allocation5] sm:$0xf]  ;;  %v42_v2 = vld [vmem:[#allocation2] sm:$0x3]  ;;  %s650_s27 = smov [#allocation7]  }
  0x1b   :  { %550 = vmatprep.subr.mxu1 %v648_v0  ;;  %552 = vmatprep.mubr.msk.f32.mxu1 %vm649_vm0, %v648_v0  ;;  %v50_v3 = vsel %vm48_vm1, %v43_v1, 0  ;;  %v46_v4 = vsel %vm44_vm2, %v42_v2, 0  ;;  %v531_v29 = vld [vmem:[%s699_s2] ss:$0 sm:$0xff]  ;;  %s521_s28 = sshll.u32 %s650_s27, 4  ;;  %s522_s28 = int_to_ptr.vmem [resolvable:$true] %s521_s28 }
  0x1c   :  { %v83_v5 = vand.u32 4294901760, %v50_v3  ;;  %v118_v6 = vand.u32 4294901760, %v46_v4  ;;  %v532_v33 = vld [vmem:[%s700_s3] ss:$0 sm:$0xff]  ;;  %s620_s29 = scalar_lea.vmem %s522_s28, 32  ;;  %p625_p11 = scmp.lt.s32.totalorder %s522_s28, %s522_s28 }
  0x1d   :  { %p621_p10 = scmp.ne.s32.totalorder %s522_s28, %s620_s29  ;;  %p626_p12 = scmp.lt.s32.totalorder %s620_s29, %s620_s29 }
  0x1e   :  { %546 = vmatpush3.msra.mxu0 %v83_v5  ;;  %v119_v7 = vsub.f32 %v46_v4, %v118_v6  ;;  %v160_v8 = vsub.f32 %v50_v3, %v83_v5 }
  0x1f   :  { %555 = vmatprep.subr.mxu0 %v648_v0  ;;  %p627_p13 = por %p626_p12, %p625_p11 }
  0x20   :  { %v120_v9 = vand.u32 4294901760, %v119_v7  ;;  %v161_v10 = vand.u32 4294901760, %v160_v8 }
  0x21   :  { %p628_p0 = pnand %p627_p13, %p621_p10 }
  0x22   :  { %v121_v11 = vsub.f32 %v119_v7, %v120_v9  ;;  %v162_v12 = vsub.f32 %v160_v8, %v161_v10 }
  0x24   :  { %v122_v13 = vand.u32 4294901760, %v121_v11  ;;  %v163_v14 = vand.u32 4294901760, %v162_v12 }
  0x26   :  { %548 = vmatmul.mubr.f32.vlgmr.msra.gmra.mxu0 %v122_v13  ;;  %551 = vmatpush3.msra.mxu1 %v163_v14 }
  0x27   :  { %556 = vmatpush3.msra.mxu0 %v160_v8  ;;  %553 = vmatmul.mubr.f32.vlgmr.msra.gmra.mxu1 %v118_v6 }
  0x28   :  { %560 = vmatprep.subr.mxu1 %v648_v0  ;;  %557 = vmatprep.mubr.msk.f32.mxu0 %vm649_vm0, %v648_v0 }
  0x29   :  { %561 = vmatpush3.msra.mxu1 %v83_v5  ;;  %565 = vmatprep.subr.mxu0 %v648_v0 }
  0x2a   :  { %558 = vmatmul.mubr.f32.vlgmr.msra.gmra.mxu0 %v119_v7  ;;  %562 = vmatprep.mubr.msk.f32.mxu1 %vm649_vm0, %v648_v0 }
  0x2b   :  { %566 = vmatpush3.msra.mxu0 %v161_v10  ;;  %563 = vmatmul.mubr.f32.vlgmr.msra.gmra.mxu1 %v120_v9 }
  0x2c   :  { %570 = vmatprep.subr.mxu1 %v648_v0  ;;  %567 = vmatprep.mubr.msk.f32.mxu0 %vm649_vm0, %v648_v0 }
  0x2d   :  { %571 = vmatpush3.msra.mxu1 %v83_v5  ;;  %572 = vmatprep.mubr.msk.f32.mxu1 %vm649_vm0, %v648_v0 }
  0x2e   :  { %568 = vmatmul.mubr.f32.vlgmr.msra.gmra.mxu0 %v118_v6 }
  0x2f   :  { %573 = vmatmul.mubr.f32.vlgmr.msra.gmra.mxu1 %v118_v6 }
  0xe6   :  { %v124_v15 = vpop.f32.mrf.mxu0 }
  0xe7   :  { %v200_v16 = vpop.f32.mrf.mxu1 }
  0xe8   :  { %v201_v17 = vadd.f32 %v200_v16, %v124_v15  ;;  %v549_v18 = vpop.f32.mrf.mxu0 }
  0xe9   :  { %v554_v19 = vpop.f32.mrf.mxu1 }
  0xea   :  { %v274_v20 = vpop.f32.mrf.mxu0 }
  0xeb   :  { %v275_v21 = vadd.f32 %v274_v20, %v201_v17  ;;  %v348_v22 = vpop.f32.mrf.mxu1 }
  0xec   :  { %v559_v23 = vpop.f32.mrf.mxu0 }
  0xed   :  { %v349_v24 = vadd.f32 %v348_v22, %v275_v21  ;;  %v564_v25 = vpop.f32.mrf.mxu1 }
  0xee   :  { %v422_v26 = vpop.f32.mrf.mxu0 }
  0xef   :  { %v423_v27 = vadd.f32 %v422_v26, %v349_v24  ;;  %v494_v28 = vpop.f32.mrf.mxu1 }
  0xf0   :  { %v569_v30 = vpop.f32.mrf.mxu0 }
  0xf1   :  { %v495_v31 = vadd.f32 %v494_v28, %v423_v27  ;;  %v574_v32 = vpop.f32.mrf.mxu1 }
  0xf3   :  { %v505_v34 = vmul.f32 %v531_v29, %v495_v31 }
  0xf5   :  { %v513_v35 = vadd.f32 %v532_v33, %v505_v34 }
  0xf7   :  { %514 = vst [vmem:[#allocation7] sm:$0x3] %v513_v35 }
  0xf8   :  { %631 = shalt.err (!%p628_p0)
}
  0xf9   :  { %524 = dma.vmem_to_hbm [thread:$0]  %s522_s28, 32, %s701_s4, [#allocation4]  }
  0xfa   :  { %644 = dma.done.wait [#allocation4], 32  }
  0xfb   :  { %645 = vsyncadd [#allocation4], 4294967264 }
  0xfc   :  { %528 = vsyncpa [#allocation3], 1 }
  0xfd   :  { %529 = vsyncpa [#allocation6], 1 }
  0xfe   :  { %530 = vsyncpa [#allocation4], 1 }

</bundles_post_ra>
